<compile_context>
chip_gen: v7x
topology: tpu7x:2x2x1
jax: 0.10.0
libtpu: 0.0.40
codegen_flags: <defaults>
</compile_context>

<pallas_src>
import functools

import jax
import jax.numpy as jnp
from jax import lax
from jax.experimental import pallas as pl
from jax.experimental.pallas import tpu as pltpu


def _round_up(x, m):
    return (x + m - 1) // m * m


def _cdiv(a, b):
    return (a + b - 1) // b


def _vmem_capacity_bytes():
    """Per-TensorCore VMEM capacity; conservative fallback = v7x (64 MiB)."""
    try:
        info = pltpu.get_tpu_info()
        cap = getattr(info, "vmem_capacity_bytes", None)
        if cap:
            return int(cap)
    except Exception:
        pass
    return 64 * 1024 * 1024


def _vmem_budget(tm, tn, d, head_bytes, dep_bytes, u_bytes, u_bufs,
                 mxu_bytes, out_bytes):
    return (2 * tm * tn * out_bytes        # output blocks (double-buffered)
            + 2 * tm * d * head_bytes      # head blocks
            + 2 * tn * d * dep_bytes       # dep blocks
            + u_bufs * d * d * u_bytes     # U (resident, never re-fetched)
            + tm * d * mxu_bytes)          # hU scratch


def _bilinear_attn_kernel(head_ref, u_ref, dep_ref, out_ref, hu_ref, *,
                          mxu_dtype):
    # head_ref: (1, tm, D)   input dtype
    # u_ref:    (D, D)       input dtype  (resident for the whole grid)
    # dep_ref:  (1, tn, D)   input dtype
    # out_ref:  (1, tm, tn)  out dtype
    # hu_ref:   (tm, D)      mxu_dtype VMEM scratch, persists across axis 2

    # hU = head_tile @ U — recomputed only when the dep-tile axis restarts.
    # Valid only because axis 2 is the innermost, sequentially iterated
    # ("arbitrary") grid axis: j restarts at 0 for every (b, i).
    @pl.when(pl.program_id(2) == 0)
    def _():
        h = head_ref[0].astype(mxu_dtype)
        u = u_ref[...].astype(mxu_dtype)
        hu = jnp.dot(h, u, preferred_element_type=jnp.float32)
        # NOTE: hU is rounded once to bf16 here (same rounding point as the
        # bf16 MXU operand of the second matmul would impose anyway).
        hu_ref[...] = hu.astype(hu_ref.dtype)

    # NT contraction (tm, D) x (tn, D) over D — same form as flash-attention
    # q @ k^T; Mosaic feeds the MXU directly, no dep^T materialized.
    # TODO(synk): confirm via pl.lower_as_mlir that no per-step vxpose of the
    # dep tile is emitted on the target generation; if one is, pre-transpose
    # dep to (B, D, S) in the wrapper and use a (1, D, tn) BlockSpec instead.
    d = dep_ref[0].astype(mxu_dtype)
    out = lax.dot_general(
        hu_ref[...], d,
        dimension_numbers=(((1,), (1,)), ((), ())),
        preferred_element_type=jnp.float32)
    out_ref[0] = out.astype(out_ref.dtype)


def bilinear_2d_attention(head, dep, u, *, tile_m=1024, tile_n=1024,
                          mxu_dtype=jnp.bfloat16, out_dtype=jnp.bfloat16):
    """out[b,i,l] = sum_{j,k} head[b,i,j] * U[j,k] * dep[b,l,k].

    out_dtype defaults to bf16 (recommended fast path: writeback of the
    B*S*S output dominates HBM traffic).  Use out_dtype=jnp.float32 to
    reproduce the PyTorch module's output dtype bit-for-layout.
    """
    B, S, D = head.shape
    assert dep.shape == (B, S, D), dep.shape
    assert u.shape == (D, D), u.shape

    # ---- tile selection -------------------------------------------------
    # tn (output last dim) must be a multiple of 128 (unmasked, lane-dense
    # stores); tm a multiple of 16 (bf16 sublane packing).
    tm = min(_round_up(int(tile_m), 16), _round_up(S, 16))
    tn = min(_round_up(int(tile_n), 128), _round_up(S, 128))

    # v7x has 2 TensorCores: make sure the parallel space (B * #i-tiles)
    # offers at least 2 blocks so one core does not idle.
    if B * _cdiv(S, tm) < 2 and S >= 32:
        tm = max(16, _round_up(_cdiv(S, 2), 16))

    mxu_bytes = jnp.dtype(mxu_dtype).itemsize
    out_bytes = jnp.dtype(out_dtype).itemsize
    head_bytes = head.dtype.itemsize
    u_bytes = u.dtype.itemsize

    # U's block index never changes; single-buffer it when large so the VMEM
    # headroom goes to bigger tiles (matters most on v7x's 64 MiB VMEM).
    single_buffer_u = D * D * u_bytes >= (2 << 20)
    u_bufs = 1 if single_buffer_u else 2

    # Shrink tiles until the double-buffered working set fits in ~70% of this
    # generation's VMEM (128 MiB v5e/v6e, 64 MiB v7x), with margin for the
    # compiler's internal scratch.  Shrink tn first: shrinking tm adds dep
    # re-read traffic (dep is re-fetched once per i-tile).
    vmem_cap = _vmem_capacity_bytes()
    limit_cap = int(0.70 * vmem_cap)
    margin = 6 << 20
    while _vmem_budget(tm, tn, D, head_bytes, dep.dtype.itemsize, u_bytes,
                       u_bufs, mxu_bytes, out_bytes) > limit_cap - margin:
        if tn > 256:
            tn = max(256, _round_up(tn // 2, 128))
        elif tm > 64:
            tm = max(64, _round_up(tm // 2, 16))
        else:
            break

    # Pad head rows to a tm multiple and dep rows to a tn multiple
    # INDEPENDENTLY (no lcm over-padding of the S x S output writeback).
    s_pad_m = _round_up(S, tm)
    s_pad_n = _round_up(S, tn)
    n_i_tiles = s_pad_m // tm

    # dep is re-read once per i-tile; a one-time wrapper cast to the MXU
    # dtype pays for itself once it is re-read >= 4 times.  Otherwise all
    # casts happen inside the kernel (no extra wrapper HBM copy passes).
    if dep.dtype != mxu_dtype and n_i_tiles >= 4:
        dep = dep.astype(mxu_dtype)
    dep_bytes = dep.dtype.itemsize

    if s_pad_m != S:
        head = jnp.pad(head, ((0, 0), (0, s_pad_m - S), (0, 0)))
    if s_pad_n != S:
        dep = jnp.pad(dep, ((0, 0), (0, s_pad_n - S), (0, 0)))

    grid = (B, s_pad_m // tm, s_pad_n // tn)

    budget = _vmem_budget(tm, tn, D, head_bytes, dep_bytes, u_bytes, u_bufs,
                          mxu_bytes, out_bytes)
    vmem_limit_bytes = int(min(max(budget + margin, 32 << 20),
                               max(limit_cap, budget + margin)))

    cost = pl.CostEstimate(
        flops=2 * B * s_pad_m * D * (D + s_pad_n),
        transcendentals=0,
        bytes_accessed=(B * s_pad_m * D * head_bytes            # head, once
                        + B * s_pad_n * D * dep_bytes * n_i_tiles  # dep re-reads
                        + D * D * u_bytes                        # U, resident
                        + B * s_pad_m * s_pad_n * out_bytes),    # output writeback
    )

    u_map = lambda b, i, j: (0, 0)
    if single_buffer_u:
        u_spec = pl.BlockSpec((D, D), u_map, pipeline_mode=pl.Buffered(1))
    else:
        u_spec = pl.BlockSpec((D, D), u_map)

    kernel = functools.partial(_bilinear_attn_kernel, mxu_dtype=mxu_dtype)

    out = pl.pallas_call(
        kernel,
        out_shape=jax.ShapeDtypeStruct((B, s_pad_m, s_pad_n), out_dtype),
        grid_spec=pltpu.PrefetchScalarGridSpec(
            num_scalar_prefetch=0,
            grid=grid,
            in_specs=[
                pl.BlockSpec((1, tm, D), lambda b, i, j: (b, i, 0)),  # head
                u_spec,                                               # U
                pl.BlockSpec((1, tn, D), lambda b, i, j: (b, j, 0)),  # dep
            ],
            out_specs=pl.BlockSpec((1, tm, tn), lambda b, i, j: (b, i, j)),
            scratch_shapes=[pltpu.VMEM((tm, D), mxu_dtype)],          # hU reuse
        ),
        compiler_params=pltpu.CompilerParams(
            # b / i-tile axes are independent -> sharded across v7x's 2 TCs;
            # the j (dep-tile) axis MUST stay innermost + "arbitrary" for the
            # hU scratch reuse (pl.when(j == 0)) to be valid.
            dimension_semantics=("parallel", "parallel", "arbitrary"),
            vmem_limit_bytes=vmem_limit_bytes,
        ),
        cost_estimate=cost,
    )(head, u, dep)

    if s_pad_m != S or s_pad_n != S:
        out = out[:, :S, :S]
    return out


def _xavier_uniform(key, shape, dtype=jnp.float32):
    # matches torch.nn.init.xavier_uniform_ bound for a 2-D weight
    fan_in, fan_out = shape[1], shape[0]
    bound = (6.0 / (fan_in + fan_out)) ** 0.5
    return jax.random.uniform(key, shape, dtype=dtype, minval=-bound, maxval=bound)


if __name__ == "__main__":
    B, S, D = 2, 8, 32

    key = jax.random.PRNGKey(0)
    k_head, k_dep, k_u = jax.random.split(key, 3)

    head = jax.random.normal(k_head, (B, S, D), dtype=jnp.float32)
    dep = jax.random.normal(k_dep, (B, S, D), dtype=jnp.float32)
    # deterministic in-script parameter init (label_U_diag: (dim, dim))
    label_U_diag = _xavier_uniform(k_u, (D, D))

    out = bilinear_2d_attention(head, dep, label_U_diag)   # bf16 fast path
    out = jax.block_until_ready(out)
    assert out.shape == (B, S, S)
    out_f32 = out.astype(jnp.float32)

    # Reference consistent with the kernel's bf16-operand / f32-accumulate /
    # bf16-output path.
    head_q = head.astype(jnp.bfloat16).astype(jnp.float32)
    dep_q = dep.astype(jnp.bfloat16).astype(jnp.float32)
    u_q = label_U_diag.astype(jnp.bfloat16).astype(jnp.float32)
    hu_ref = jnp.einsum("bij,jk->bik", head_q, u_q,
                        precision=lax.Precision.HIGHEST)
    hu_ref = hu_ref.astype(jnp.bfloat16).astype(jnp.float32)
    ref = jnp.einsum("bik,blk->bil", hu_ref, dep_q,
                     precision=lax.Precision.HIGHEST)
    ref = ref.astype(out.dtype).astype(jnp.float32)
    assert jnp.allclose(out_f32, ref, atol=3e-2, rtol=3e-2), \
        "mismatch vs bf16-consistent reference"

    # Sanity check vs the exact fp32 einsum (loose tolerance: bf16 operands
    # and bf16 output).
    ref_f32 = jnp.einsum("bij,jk,blk->bil", head, label_U_diag, dep)
    assert jnp.allclose(out_f32, ref_f32, atol=2.5e-1, rtol=5e-2), \
        "mismatch vs f32 reference"

    print("KERNEL_OK")
</pallas_src>

<mosaic_0001>
module attributes {stable_mosaic.version = 11 : i64} {
  func.func @_bilinear_attn_kernel(%arg0: i32, %arg1: i32, %arg2: i32, %arg3: memref<1x16x32xf32, #tpu.memory_space<vmem>>, %arg4: memref<32x32xf32, #tpu.memory_space<vmem>>, %arg5: memref<1x128x32xf32, #tpu.memory_space<vmem>>, %arg6: memref<1x16x128xbf16, #tpu.memory_space<vmem>>, %arg7: memref<16x32xbf16, #tpu.memory_space<vmem>>) attributes {dimension_semantics = [#tpu.dimension_semantics<parallel>, #tpu.dimension_semantics<parallel>, #tpu.dimension_semantics<arbitrary>], iteration_bounds = array<i64: 2, 1, 1>, scalar_prefetch = 0 : i64, scratch_operands = 1 : i64, tpu.core_type = #tpu.core_type<tc>, window_params = [{transform_indices = @transform_0, window_bounds = array<i64: 1, 16, 32>}, {pipeline_mode = #tpu.pipeline_mode<synchronous>, transform_indices = @transform_1, window_bounds = array<i64: 32, 32>}, {transform_indices = @transform_2, window_bounds = array<i64: 1, 128, 32>}, {transform_indices = @transform_3, window_bounds = array<i64: 1, 16, 128>}]} {
    %c0_i32 = arith.constant 0 : i32
    %0 = arith.cmpi eq, %arg2, %c0_i32 : i32
    %1 = arith.extui %0 : i1 to i32
    %c0_i32_0 = arith.constant 0 : i32
    %2 = arith.cmpi ne, %1, %c0_i32_0 : i32
    scf.if %2 {
      %c0_8 = arith.constant 0 : index
      %c0_9 = arith.constant 0 : index
      %c0_10 = arith.constant 0 : index
      %12 = vector.load %arg3[%c0_8, %c0_9, %c0_10] : memref<1x16x32xf32, #tpu.memory_space<vmem>>, vector<1x16x32xf32>
      %13 = vector.shape_cast %12 : vector<1x16x32xf32> to vector<16x32xf32>
      %14 = arith.truncf %13 : vector<16x32xf32> to vector<16x32xbf16>
      %c0_11 = arith.constant 0 : index
      %c0_12 = arith.constant 0 : index
      %15 = vector.load %arg4[%c0_11, %c0_12] : memref<32x32xf32, #tpu.memory_space<vmem>>, vector<32x32xf32>
      %16 = arith.truncf %15 : vector<32x32xf32> to vector<32x32xbf16>
      %cst_13 = arith.constant dense<0.000000e+00> : vector<16x32xf32>
      %17 = tpu.matmul %14, %16, %cst_13 {dimension_numbers = #tpu.dot_dimension_numbers<[1], [0], [0], [1], [0, 0, 1, 1], [], []>} : vector<16x32xbf16>, vector<32x32xbf16>, vector<16x32xf32> -> vector<16x32xf32>
      %18 = arith.truncf %17 : vector<16x32xf32> to vector<16x32xbf16>
      %c0_14 = arith.constant 0 : index
      %c0_15 = arith.constant 0 : index
      %19 = vector.load %arg7[%c0_14, %c0_15] : memref<16x32xbf16, #tpu.memory_space<vmem>>, vector<16x32xbf16>
      tpu.vector_store %arg7[%c0_14, %c0_15], %18 {strides = array<i32>} : memref<16x32xbf16, #tpu.memory_space<vmem>>, vector<16x32xbf16>,
    } else {
    }
    %c0 = arith.constant 0 : index
    %c0_1 = arith.constant 0 : index
    %c0_2 = arith.constant 0 : index
    %3 = vector.load %arg5[%c0, %c0_1, %c0_2] : memref<1x128x32xf32, #tpu.memory_space<vmem>>, vector<1x128x32xf32>
    %4 = vector.shape_cast %3 : vector<1x128x32xf32> to vector<128x32xf32>
    %5 = arith.truncf %4 : vector<128x32xf32> to vector<128x32xbf16>
    %c0_3 = arith.constant 0 : index
    %c0_4 = arith.constant 0 : index
    %6 = vector.load %arg7[%c0_3, %c0_4] : memref<16x32xbf16, #tpu.memory_space<vmem>>, vector<16x32xbf16>
    %cst = arith.constant dense<0.000000e+00> : vector<16x128xf32>
    %7 = tpu.matmul %6, %5, %cst {dimension_numbers = #tpu.dot_dimension_numbers<[1], [1], [0], [0], [0, 0, 1, 0], [], []>} : vector<16x32xbf16>, vector<128x32xbf16>, vector<16x128xf32> -> vector<16x128xf32>
    %8 = arith.truncf %7 : vector<16x128xf32> to vector<16x128xbf16>
    %c0_5 = arith.constant 0 : index
    %c0_6 = arith.constant 0 : index
    %c0_7 = arith.constant 0 : index
    %9 = vector.load %arg6[%c0_5, %c0_6, %c0_7] : memref<1x16x128xbf16, #tpu.memory_space<vmem>>, vector<1x16x128xbf16>
    %10 = vector.shape_cast %9 : vector<1x16x128xbf16> to vector<16x128xbf16>
    %11 = vector.shape_cast %8 : vector<16x128xbf16> to vector<1x16x128xbf16>
    tpu.vector_store %arg6[%c0_5, %c0_6, %c0_7], %11 {strides = array<i32>} : memref<1x16x128xbf16, #tpu.memory_space<vmem>>, vector<1x16x128xbf16>,
    return
  }
  func.func @transform_0(%arg0: i32, %arg1: i32, %arg2: i32) -> (i32, i32, i32) {
    %c0_i32 = arith.constant 0 : i32
    %c0_i32_0 = arith.constant 0 : i32
    return %arg0, %arg1, %c0_i32 : i32, i32, i32
  }
  func.func @transform_1(%arg0: i32, %arg1: i32, %arg2: i32) -> (i32, i32) {
    %c0_i32 = arith.constant 0 : i32
    %c0_i32_0 = arith.constant 0 : i32
    %c0_i32_1 = arith.constant 0 : i32
    return %c0_i32, %c0_i32_0 : i32, i32
  }
  func.func @transform_2(%arg0: i32, %arg1: i32, %arg2: i32) -> (i32, i32, i32) {
    %c0_i32 = arith.constant 0 : i32
    %c0_i32_0 = arith.constant 0 : i32
    return %arg0, %arg2, %c0_i32 : i32, i32, i32
  }
  func.func @transform_3(%arg0: i32, %arg1: i32, %arg2: i32) -> (i32, i32, i32) {
    %c0_i32 = arith.constant 0 : i32
    return %arg0, %arg1, %arg2 : i32, i32, i32
  }
}

</mosaic_0001>

<bundles_post_ra>
// kernel: tpu_custom_call.1
= control target key start
LH: loop header
LB: loop body
LE: loop exit
PB: predicated region body
PF: predicated region fallthrough
CT: control target
= control target key end

     0   :  { %8 = vsyncpa [#allocation4], 0  ;;  %s920_s0 = inlined_call_operand.vmem [shape: f32[2,16,32], index: 0, kind: input, shape index: {}]   ;;  %s921_s1 = inlined_call_operand.vmem [shape: f32[32,32], index: 1, kind: input, shape index: {}]   ;;  %s922_s2 = inlined_call_operand.vmem [shape: f32[2,128,32], index: 2, kind: input, shape index: {}]   ;;  %s923_s3 = inlined_call_operand.hbm [shape: bf16[2,16,128], index: 3, kind: output, shape index: {}]  }
   0x1   :  { %10 = vsyncpa [#allocation4 + $0x1], 0  ;;  %s761_s12 = smov 0   ;;  %s763_s13 = smov 0  }
   0x2   :  { %s765_s14 = smov 0   ;;  %s767_s15 = smov 0  }
   0x3   :  { %s769_s16 = smov 0   ;;  %s771_s17 = smov 0  }
   0x4 LB: > { %s528_s18 = sadd.s32 4294967295, %s734_s17   ;;  %s529_s19 = sadd.s32 4294967294, %s734_s17   ;;  %s734_s17 = sphi %s771_s17, %s16_s17   ;;  %s730_s16 = sphi %s769_s16, %s930_s16   ;;  %s726_s15 = sphi %s767_s15, %s929_s15   ;;  %s722_s14 = sphi %s765_s14, %s928_s14   ;;  %s718_s13 = sphi %s763_s13, %s927_s13   ;;  %s714_s12 = sphi %s761_s12, %s926_s12  }
   0x5   : > { %s35_s20 = sadd.s32 1, %s730_s16  ;;  %s123_s21 = sadd.s32 1, %s722_s14 }
   0x6   : > { %p37_p0 = scmp.ge.s32.totalorder %s35_s20, 2  ;;  %p133_p1 = scmp.ne.s32.totalorder %s722_s14, %s718_s13 }
   0x7   : > { %p134_p2 = scmp.eq.s32.totalorder %s528_s18, 1  ;;  %p139_p3 = scmp.ne.s32.totalorder %s718_s13, %s714_s12 }
   0x8   : > { %s932_s20 = smov (%p37_p0, %s35_s20), 0  ;;  %p140_p5 = scmp.eq.s32.totalorder %s529_s19, 1 }
   0x9   : > { %p801_p4 = por %p134_p2, %p133_p1  ;;  %s116_s23 = ssub.s32 %s730_s16, %s932_s20 }
   0xa   : > { %p532_p6 = scmp.ge.s32.totalorder %s734_s17, 1  ;;  %p121_p7 = scmp.eq.s32.totalorder %s116_s23, 0 }
   0xb   : > { %p808_p8 = por %p140_p5, %p139_p3  ;;  %p187_p9 = scmp.lt.s32.totalorder %s734_s17, 3 }
   0xc   : > { %s814_s25 = scalar_select %p121_p7, %s722_s14, %s123_s21  }
   0xd   : > { %p188_p10 = pnand %p532_p6, %p187_p9 }
   0xe   : > { %v253_v0 = vld [vmem:[%s921_s1] sm:$0xff] (!%p188_p10)  ;;  %v254_v1 = vld [vmem:[%s921_s1 + $0x8] sm:$0xff] (!%p188_p10)  ;;  %v255_v2 = vld [vmem:[%s921_s1 + $0x10] sm:$0xff] (!%p188_p10)  ;;  %p225_p11 = scmp.lt.s32.totalorder (!%p188_p10), %s726_s15, 1  ;;  %v736_v3 = vmov (!%p188_p10), 0.0   ;;  %vm737_vm0 = vmmov (!%p188_p10), 0  }
   0xf   : > { %191 = sbr.rel (%p188_p10) target bundleno = 484 (0x1e4), region = 32  ;;  %569 = vmatprep.subr.bf16.mxu0 (!%p188_p10), %v736_v3  ;;  %v257_v4 = vpack.c.bf16 (!%p188_p10), %v254_v1, %v253_v0  ;;  %v256_v5 = vld [vmem:[%s921_s1 + $0x18] sm:$0xff] (!%p188_p10)  ;;  %573 = vmatprep.mubr.msk.bf16.mxu0 (!%p188_p10), %vm737_vm0, %v736_v3  ;;  %vm259_vm1 = vcmask (!%p188_p10), 261120   ;;  %s221_s26 = sand.u32 (!%p188_p10), 1, %s718_s13  }
  0x10   : > { %577 = vmatprep.subr.bf16.mxu1 (!%p188_p10), %v736_v3  ;;  %593 = vmatprep.mubr.msk.bf16.mxu1 (!%p188_p10), %vm737_vm0, %v736_v3  ;;  %v258_v6 = vpack.c.bf16 (!%p188_p10), %v256_v5, %v255_v2  ;;  %s533_s27 = sshll.u32 (!%p188_p10), %s221_s26, 3  ;;  %s551_s30 = sshll.u32 (!%p188_p10), %s726_s15, 7 }
  0x11   : > { %570 = vmatpush3.bf16.msra.mxu0 (!%p188_p10), %v257_v4  ;;  %s223_s28 = scalar_lea.vmem (!%p188_p10), [#allocation3], %s533_s27  ;;  %s872_s6 = scalar_lea.hbm (!%p188_p10), %s923_s3, %s551_s30 }
  0x12   : > { %571 = vmatprep.subr.bf16.mxu0 (!%p188_p10), %v736_v3  ;;  %s427_s29 = sshll.u32 (!%p188_p10), %s223_s28, 4  ;;  %s867_s29 = int_to_ptr.vmem [resolvable:$true] %s427_s29 }
  0x15   : > { %572 = vmatpush3.bf16.msra.mxu0 (!%p188_p10), %v258_v6 }
  0x16   : > { %s226_s7 = scalar_select %p225_p11, %s726_s15, 1 }
  0x17   : > { %s738_s15 = smov [#allocation3]  }
  0x18   : > { %s547_s8 = sshll.u32 %s226_s7, 4  ;;  %s548_s9 = sshll.u32 %s226_s7, 7 }
  0x19   : > { %s232_s18 = scalar_lea.vmem %s920_s0, %s547_s8  ;;  %s836_s23 = scalar_lea.vmem %s922_s2, %s548_s9 }
  0x1a   : > { %v250_v7 = vld [vmem:[%s232_s18] sm:$0xff]  ;;  %v251_v8 = vld [vmem:[%s232_s18 + $0x8] sm:$0xff]  ;;  %v308_v13 = vld [vmem:[%s836_s23 + $0x10] sm:$0xff]  ;;  %s874_s7 = scalar_lea.sflag [#allocation4], %s221_s26  ;;  %s656_s8 = scalar_lea.vmem %s867_s29, 128 }
  0x1b   : > { %v306_v9 = vld [vmem:[%s836_s23] sm:$0xff]  ;;  %v252_v10 = vpack.c.bf16 %v251_v8, %v250_v7  ;;  %v307_v11 = vld [vmem:[%s836_s23 + $0x8] sm:$0xff]  ;;  %v309_v14 = vld [vmem:[%s836_s23 + $0x18] sm:$0xff]  ;;  %p657_p12 = scmp.ne.s32.totalorder %s867_s29, %s656_s8  ;;  %s660_s9 = sshll.u32 %s738_s15, 4  ;;  %s661_s9 = int_to_ptr.vmem [resolvable:$false] %s660_s9 }
  0x1c   : > { %v322_v12 = vpack.c.bf16 %v307_v11, %v306_v9  ;;  %v323_v16 = vpack.c.bf16 %v309_v14, %v308_v13  ;;  %v310_v18 = vld [vmem:[%s836_s23 + $0x20] sm:$0xff]  ;;  %v311_v19 = vld [vmem:[%s836_s23 + $0x28] sm:$0xff]  ;;  %v312_v22 = vld [vmem:[%s836_s23 + $0x30] sm:$0xff]  ;;  %s662_s10 = scalar_lea.vmem %s661_s9, 256  ;;  %p663_p1 = scmp.lt.s32.totalorder %s867_s29, %s661_s9 }
  0x1d   : > { %574 = vmatmul.mubr.msk.bf16.vlgmr.msra.gmra.mrb[0].mxu0 %vm259_vm1, %v252_v10  ;;  %v324_v20 = vpack.c.bf16 %v311_v19, %v310_v18  ;;  %v313_v23 = vld [vmem:[%s836_s23 + $0x38] sm:$0xff]  ;;  %v314_v26 = vld [vmem:[%s836_s23 + $0x40] sm:$0xff]  ;;  %v315_v27 = vld [vmem:[%s836_s23 + $0x48] sm:$0xff]  ;;  %p658_p13 = pnand %p657_p12, %p801_p4  ;;  %p664_p2 = scmp.lt.s32.totalorder %s662_s10, %s656_s8 }
  0x1e   : > { %v336_v15 = vsel %vm259_vm1, %v322_v12, 0  ;;  %v339_v17 = vsel %vm259_vm1, %v323_v16, 0  ;;  %v325_v24 = vpack.c.bf16 %v313_v23, %v312_v22  ;;  %v326_v28 = vpack.c.bf16 %v315_v27, %v314_v26  ;;  %v316_v30 = vld [vmem:[%s836_s23 + $0x50] sm:$0xff]  ;;  %v317_v31 = vld [vmem:[%s836_s23 + $0x58] sm:$0xff]  ;;  %v318_v34 = vld [vmem:[%s836_s23 + $0x60] sm:$0xff] }
  0x1f   : > { %578 = vmatpush3.bf16.xpose.msra.mxu1 %v336_v15  ;;  %v342_v21 = vsel %vm259_vm1, %v324_v20, 0  ;;  %v327_v32 = vpack.c.bf16 %v317_v31, %v316_v30  ;;  %v319_v35 = vld [vmem:[%s836_s23 + $0x68] sm:$0xff]  ;;  %v320_v38 = vld [vmem:[%s836_s23 + $0x70] sm:$0xff]  ;;  %v321_v39 = vld [vmem:[%s836_s23 + $0x78] sm:$0xff]  ;;  %p659_p0 = pneg %p658_p13  ;;  %p665_p3 = por %p664_p2, %p663_p1 }
  0x20   : > { %579 = vmatprep.subr.bf16.mxu1 %v736_v3  ;;  %v345_v25 = vsel %vm259_vm1, %v325_v24, 0  ;;  %v348_v29 = vsel %vm259_vm1, %v326_v28, 0  ;;  %v328_v36 = vpack.c.bf16 %v319_v35, %v318_v34  ;;  %v329_v40 = vpack.c.bf16 %v321_v39, %v320_v38 }
  0x21   : > { %v351_v33 = vsel %vm259_vm1, %v327_v32, 0  ;;  %p666_p5 = pnand %p665_p3, %p659_p0 }
  0x22   : > { %v354_v37 = vsel %vm259_vm1, %v328_v36, 0  ;;  %v357_v41 = vsel %vm259_vm1, %v329_v40, 0 }
  0x27   : > { %580 = vmatpush3.bf16.xpose.msra.mxu1 %v339_v17 }
  0x28   : > { %581 = vmatprep.subr.bf16.mxu1 %v736_v3 }
  0x2f   : > { %582 = vmatpush3.bf16.xpose.msra.mxu1 %v342_v21 }
  0x30   : > { %583 = vmatprep.subr.bf16.mxu1 %v736_v3 }
  0x37   : > { %584 = vmatpush3.bf16.xpose.msra.mxu1 %v345_v25 }
  0x38   : > { %585 = vmatprep.subr.bf16.mxu1 %v736_v3 }
  0x3f   : > { %586 = vmatpush3.bf16.xpose.msra.mxu1 %v348_v29 }
  0x40   : > { %587 = vmatprep.subr.bf16.mxu1 %v736_v3 }
  0x47   : > { %588 = vmatpush3.bf16.xpose.msra.mxu1 %v351_v33 }
  0x48   : > { %589 = vmatprep.subr.bf16.mxu1 %v736_v3 }
  0x4f   : > { %590 = vmatpush3.bf16.xpose.msra.mxu1 %v354_v37 }
  0x50   : > { %591 = vmatprep.subr.bf16.mxu1 %v736_v3 }
  0x57   : > { %592 = vmatpush3.bf16.xpose.msra.mxu1 %v357_v41 }
  0xf0   : > { %v297_v42 = vpop.f32.mrb[0].mxu0 }
  0xf1   : > { %v575_v43 = vpop.f32.mrb[1].mxu0 }
  0xf2   : > { %v300_v44 = vpop.f32.mrb[2].mxu0 }
  0xf3   : > { %v304_v45 = vpack.c.bf16 %v300_v44, %v297_v42  ;;  %v576_v46 = vpop.f32.mrb[3].mxu0 }
  0xf5   : > { %305 = vst.msk [vmem:[#allocation2] sm:$0xff] %vm259_vm1, %v304_v45 }
  0xfc   : > { %v330_v47 = vld [vmem:[#allocation2] sm:$0xff] }
  0xfd   : > { %594 = vmatmul.mubr.msk.bf16.vlgmr.msra.gmra.mrb[0].mxu1 %vm259_vm1, %v330_v47 }
 0x1d0   : > { %v393_v48 = vpop.f32.mrb[0].mxu1 }
 0x1d1   : > { %v595_v49 = vpop.f32.mrb[1].mxu1 }
 0x1d2   : > { %v396_v50 = vpop.f32.mrb[2].mxu1 }
 0x1d3   : > { %v555_v51 = vpack.c.bf16 %v396_v50, %v393_v48  ;;  %v596_v52 = vpop.f32.mrb[3].mxu1 }
 0x1d5   : > { %556 = vst [vmem:[%s223_s28] sm:$0xff] %v555_v51  }
 0x1d6   : > { %669 = shalt.err (!%p666_p5)
}
 0x1d7   : > { %s670_s11 = scalar_lea.hbm %s872_s6, 128  ;;  %s674_s21 = scalar_lea.hbm %s923_s3, 256 }
 0x1d8   : > { %p671_p6 = scmp.ne.s32.totalorder %s872_s6, %s670_s11  ;;  %p675_p10 = scmp.lt.u32.totalorder %s872_s6, %s923_s3 }
 0x1d9   : > { %p676_p11 = scmp.lt.u32.totalorder %s674_s21, %s670_s11  ;;  %p678_p13 = scmp.lt.u32.totalorder %s670_s11, %s872_s6 }
 0x1da   : > { %p672_p7 = pnand %p671_p6, %p801_p4 }
 0x1db   : > { %p677_p12 = por %p676_p11, %p675_p10 }
 0x1dc   : > { %p673_p9 = pneg %p672_p7 }
 0x1dd   : > { %p679_p0 = por %p678_p13, %p677_p12 }
 0x1df   : > { %p680_p1 = pnand %p679_p0, %p673_p9 }
 0x1e1   : > { %683 = shalt.err (!%p680_p1)
}
 0x1e2   : > { %s739_s27 = smov 64   ;;  %s740_s28 = smov 4  }
 0x1e3   : > { %597 = dma.vmem_to_hbm [thread:$0]  (%p801_p4), %s867_s29, 128, %s872_s6, %s874_s7, %s739_s27, %s739_s27, %s740_s28  }
 0x1e4 PF: > { %p603_p2 = scmp.ge.s32.totalorder %s734_s17, 2  ;;  %s442_s30 = sand.u32 1, %s714_s12  }
 0x1e5   : > { %s443_s4 = scalar_lea.sflag [#allocation4], %s442_s30 }
 0x1e6   : > { %p600_p3 = pnand %p603_p2, %p808_p8 }
 0x1e8   : > { %709 = dma.done.wait (!%p600_p3), %s443_s4, 128  }
 0x1e9   : > { %711 = vsyncadd (!%p600_p3), %s443_s4, 4294967168  ;;  %s16_s17 = sadd.s32 1, %s734_s17   ;;  %s926_s12 = smov %s718_s13 }
 0x1ea   : > { %p13_p5 = scmp.ge.s32.totalorder %s16_s17, 4   ;;  %s927_s13 = smov %s722_s14 }
 0x1eb   : > { %s928_s14 = smov %s814_s25  ;;  %s929_s15 = smov %s730_s16 }
 0x1ec   : > { %s930_s16 = smov %s932_s20  ;;  %15 = sbr.rel (!%p13_p5) target bundleno = 4 (0x4), region = 74 }
 0x1f3   :  { %448 = vsyncpa [#allocation4], 1 }
 0x1f4   :  { %450 = vsyncpa [#allocation4 + $0x1], 1 }

</bundles_post_ra>
